<compile_context>
chip_gen: v7x
topology: tpu7x:2x2x1
jax: 0.10.0
libtpu: 0.0.40
codegen_flags: <defaults>
</compile_context>

<pallas_src>
import jax
import jax.numpy as jnp
from jax import lax
from jax.experimental import pallas as pl
from jax.experimental.pallas import tpu as pltpu


def _mlp_kernel(x_ref, w1_ref, b1_ref, w2_ref, b2_ref, o_ref):
    # fc1: [TM,128] @ [128,64] + [1,64]  (exact f32 on the MXU)
    h = jnp.dot(x_ref[...], w1_ref[...],
                preferred_element_type=jnp.float32,
                precision=lax.Precision.HIGHEST)
    h = h + b1_ref[...]
    # LeakyReLU, default negative_slope = 0.01
    h = jnp.where(h > 0, h, 0.01 * h)
    # fc2: [TM,64] @ [64,numclass] + [1,numclass]
    out = jnp.dot(h, w2_ref[...],
                  preferred_element_type=jnp.float32,
                  precision=lax.Precision.HIGHEST)
    out = out + b2_ref[...]
    o_ref[...] = out.astype(o_ref.dtype)


def sex_classifier_forward(x, w1, b1, w2, b2, *, tm=4096):
    """x: [B,128] f32, w1: [128,64], b1: [64], w2: [64,numclass], b2: [numclass]."""
    B, D = x.shape
    hidden = w1.shape[1]
    numclass = w2.shape[1]
    b1_2d = b1.reshape(1, -1)
    b2_2d = b2.reshape(1, -1)

    # Batch tile: always a multiple of 8 (sublane), capped by the batch size.
    tm = max(8, ((int(tm) + 7) // 8) * 8)
    b_rounded = max(8, ((B + 7) // 8) * 8)
    if B > 8:
        # Keep >= 2 grid steps so the "parallel" batch axis can be sharded
        # across v7x's two TensorCores (harmless on v5e/v6e).
        half = ((pl.cdiv(B, 2) + 7) // 8) * 8
        TM = min(tm, half, b_rounded)
    else:
        TM = min(tm, b_rounded)
    grid = (pl.cdiv(B, TM),)   # ragged last block handled by Pallas masking

    cost = pl.CostEstimate(
        flops=2 * B * (D * hidden + hidden * numclass),
        transcendentals=0,
        bytes_accessed=(B * D + B * numclass) * 4
        + (w1.size + b1.size + w2.size + b2.size) * 4,
    )

    out = pl.pallas_call(
        _mlp_kernel,
        out_shape=jax.ShapeDtypeStruct((B, numclass), x.dtype),
        grid=grid,
        in_specs=[
            pl.BlockSpec((TM, D), lambda i: (i, 0)),       # x tiles (pipelined)
            pl.BlockSpec(w1.shape, lambda i: (0, 0)),      # weights stay resident
            pl.BlockSpec(b1_2d.shape, lambda i: (0, 0)),
            pl.BlockSpec(w2.shape, lambda i: (0, 0)),
            pl.BlockSpec(b2_2d.shape, lambda i: (0, 0)),
        ],
        out_specs=pl.BlockSpec((TM, numclass), lambda i: (i, 0)),
        compiler_params=pltpu.CompilerParams(
            dimension_semantics=("parallel",),
        ),
        cost_estimate=cost,
    )(x, w1, b1_2d, w2, b2_2d)
    return out


def init_params(key, numclass=8):
    """Deterministic init mimicking weights_init_kaiming (fan_in, a=0)."""
    k1, k2, k3, k4 = jax.random.split(key, 4)
    # fc1: weight (64,128) kaiming_normal fan_in -> std = sqrt(2/128)
    w1_t = jax.random.normal(k1, (64, 128), jnp.float32) * jnp.sqrt(2.0 / 128.0)
    # PyTorch Linear bias default: U(-1/sqrt(fan_in), 1/sqrt(fan_in))
    b1 = jax.random.uniform(k2, (64,), jnp.float32,
                            minval=-1.0 / jnp.sqrt(128.0),
                            maxval=1.0 / jnp.sqrt(128.0))
    # fc2: weight (numclass,64) kaiming_normal fan_in -> std = sqrt(2/64)
    w2_t = jax.random.normal(k3, (numclass, 64), jnp.float32) * jnp.sqrt(2.0 / 64.0)
    b2 = jax.random.uniform(k4, (numclass,), jnp.float32,
                            minval=-1.0 / jnp.sqrt(64.0),
                            maxval=1.0 / jnp.sqrt(64.0))
    # store transposed ([in,out]) for the kernel
    return w1_t.T, b1, w2_t.T, b2


def _ref(x, w1, b1, w2, b2):
    h = x @ w1 + b1
    h = jnp.where(h > 0, h, 0.01 * h)
    return h @ w2 + b2


if __name__ == "__main__":
    key = jax.random.PRNGKey(0)
    kx, kx2, kp = jax.random.split(key, 3)

    numclass = 8
    w1, b1, w2, b2 = init_params(kp, numclass=numclass)

    # Small-batch check (single grid step).
    B = 8
    x = jax.random.normal(kx, (B, 128), jnp.float32)
    out = jax.block_until_ready(sex_classifier_forward(x, w1, b1, w2, b2))
    ref = _ref(x, w1, b1, w2, b2)
    assert out.shape == (B, numclass)
    assert jnp.allclose(out, ref, atol=1e-5, rtol=1e-5)

    # Multi-tile check: exercises the 1-D grid, the >=2-step megacore cap, and
    # the ragged (masked) last block — 300 = 128 + 128 + 44, no padding copy.
    B2 = 300
    x2 = jax.random.normal(kx2, (B2, 128), jnp.float32)
    out2 = jax.block_until_ready(
        sex_classifier_forward(x2, w1, b1, w2, b2, tm=128))
    ref2 = _ref(x2, w1, b1, w2, b2)
    assert out2.shape == (B2, numclass)
    assert jnp.allclose(out2, ref2, atol=1e-5, rtol=1e-5)

    print("KERNEL_OK")
</pallas_src>

<mosaic_0001>
module attributes {stable_mosaic.version = 11 : i64} {
  func.func @_mlp_kernel(%arg0: i32, %arg1: memref<8x128xf32, #tpu.memory_space<vmem>>, %arg2: memref<128x64xf32, #tpu.memory_space<vmem>>, %arg3: memref<1x64xf32, #tpu.memory_space<vmem>>, %arg4: memref<64x8xf32, #tpu.memory_space<vmem>>, %arg5: memref<1x8xf32, #tpu.memory_space<vmem>>, %arg6: memref<8x8xf32, #tpu.memory_space<vmem>>) attributes {dimension_semantics = [#tpu.dimension_semantics<parallel>], iteration_bounds = array<i64: 1>, scalar_prefetch = 0 : i64, scratch_operands = 0 : i64, tpu.core_type = #tpu.core_type<tc>, window_params = [{transform_indices = @transform_0, window_bounds = array<i64: 8, 128>}, {pipeline_mode = #tpu.pipeline_mode<synchronous>, transform_indices = @transform_1, window_bounds = array<i64: 128, 64>}, {pipeline_mode = #tpu.pipeline_mode<synchronous>, transform_indices = @transform_2, window_bounds = array<i64: 1, 64>}, {pipeline_mode = #tpu.pipeline_mode<synchronous>, transform_indices = @transform_3, window_bounds = array<i64: 64, 8>}, {pipeline_mode = #tpu.pipeline_mode<synchronous>, transform_indices = @transform_4, window_bounds = array<i64: 1, 8>}, {transform_indices = @transform_5, window_bounds = array<i64: 8, 8>}]} {
    %c0 = arith.constant 0 : index
    %c0_0 = arith.constant 0 : index
    %0 = vector.load %arg1[%c0, %c0_0] : memref<8x128xf32, #tpu.memory_space<vmem>>, vector<8x128xf32>
    %c0_1 = arith.constant 0 : index
    %c0_2 = arith.constant 0 : index
    %1 = vector.load %arg2[%c0_1, %c0_2] : memref<128x64xf32, #tpu.memory_space<vmem>>, vector<128x64xf32>
    %cst = arith.constant dense<0.000000e+00> : vector<8x64xf32>
    %2 = tpu.matmul %0, %1, %cst {dimension_numbers = #tpu.dot_dimension_numbers<[1], [0], [0], [1], [0, 0, 1, 1], [], []>, precision = #tpu.contract_precision<fp32>} : vector<8x128xf32>, vector<128x64xf32>, vector<8x64xf32> -> vector<8x64xf32>
    %c0_3 = arith.constant 0 : index
    %c0_4 = arith.constant 0 : index
    %3 = vector.load %arg3[%c0_3, %c0_4] : memref<1x64xf32, #tpu.memory_space<vmem>>, vector<1x64xf32>
    %4 = vector.broadcast %3 : vector<1x64xf32> to vector<8x64xf32>
    %5 = arith.addf %2, %4 : vector<8x64xf32>
    %cst_5 = arith.constant 0.000000e+00 : f32
    %6 = vector.broadcast %cst_5 : f32 to vector<8x64xf32>
    %7 = arith.cmpf ogt, %5, %6 : vector<8x64xf32>
    %cst_6 = arith.constant 0.00999999977 : f32
    %8 = vector.broadcast %cst_6 : f32 to vector<8x64xf32>
    %9 = arith.mulf %8, %5 : vector<8x64xf32>
    %10 = arith.select %7, %5, %9 : vector<8x64xi1>, vector<8x64xf32>
    %c0_7 = arith.constant 0 : index
    %c0_8 = arith.constant 0 : index
    %11 = vector.load %arg4[%c0_7, %c0_8] : memref<64x8xf32, #tpu.memory_space<vmem>>, vector<64x8xf32>
    %cst_9 = arith.constant dense<0.000000e+00> : vector<8x8xf32>
    %12 = tpu.matmul %10, %11, %cst_9 {dimension_numbers = #tpu.dot_dimension_numbers<[1], [0], [0], [1], [0, 0, 1, 1], [], []>, precision = #tpu.contract_precision<fp32>} : vector<8x64xf32>, vector<64x8xf32>, vector<8x8xf32> -> vector<8x8xf32>
    %c0_10 = arith.constant 0 : index
    %c0_11 = arith.constant 0 : index
    %13 = vector.load %arg5[%c0_10, %c0_11] : memref<1x8xf32, #tpu.memory_space<vmem>>, vector<1x8xf32>
    %14 = vector.broadcast %13 : vector<1x8xf32> to vector<8x8xf32>
    %15 = arith.addf %12, %14 : vector<8x8xf32>
    %c0_12 = arith.constant 0 : index
    %c0_13 = arith.constant 0 : index
    %16 = vector.load %arg6[%c0_12, %c0_13] : memref<8x8xf32, #tpu.memory_space<vmem>>, vector<8x8xf32>
    tpu.vector_store %arg6[%c0_12, %c0_13], %15 {strides = array<i32>} : memref<8x8xf32, #tpu.memory_space<vmem>>, vector<8x8xf32>,
    return
  }
  func.func @transform_0(%arg0: i32) -> (i32, i32) {
    %c0_i32 = arith.constant 0 : i32
    %c0_i32_0 = arith.constant 0 : i32
    return %arg0, %c0_i32 : i32, i32
  }
  func.func @transform_1(%arg0: i32) -> (i32, i32) {
    %c0_i32 = arith.constant 0 : i32
    %c0_i32_0 = arith.constant 0 : i32
    %c0_i32_1 = arith.constant 0 : i32
    return %c0_i32, %c0_i32_0 : i32, i32
  }
  func.func @transform_2(%arg0: i32) -> (i32, i32) {
    %c0_i32 = arith.constant 0 : i32
    %c0_i32_0 = arith.constant 0 : i32
    %c0_i32_1 = arith.constant 0 : i32
    return %c0_i32, %c0_i32_0 : i32, i32
  }
  func.func @transform_3(%arg0: i32) -> (i32, i32) {
    %c0_i32 = arith.constant 0 : i32
    %c0_i32_0 = arith.constant 0 : i32
    %c0_i32_1 = arith.constant 0 : i32
    return %c0_i32, %c0_i32_0 : i32, i32
  }
  func.func @transform_4(%arg0: i32) -> (i32, i32) {
    %c0_i32 = arith.constant 0 : i32
    %c0_i32_0 = arith.constant 0 : i32
    %c0_i32_1 = arith.constant 0 : i32
    return %c0_i32, %c0_i32_0 : i32, i32
  }
  func.func @transform_5(%arg0: i32) -> (i32, i32) {
    %c0_i32 = arith.constant 0 : i32
    %c0_i32_0 = arith.constant 0 : i32
    return %arg0, %c0_i32 : i32, i32
  }
}

</mosaic_0001>

<bundles_post_ra>
// kernel: tpu_custom_call.1
= control target key start
LH: loop header
LB: loop body
LE: loop exit
PB: predicated region body
PF: predicated region fallthrough
CT: control target
= control target key end

     0   :  { %v2008_v3 = vmov 0.0|0.0   ;;  %vm2009_vm0 = vmmov 0   ;;  %v2608_v10 = vmov 0.0   ;;  %s2601_s0 = inlined_call_operand.vmem [shape: f32[8,128], index: 0, kind: input, shape index: {}]   ;;  %s2602_s1 = inlined_call_operand.vmem [shape: f32[128,64], index: 1, kind: input, shape index: {}]   ;;  %s2603_s2 = inlined_call_operand.vmem [shape: f32[1,64], index: 2, kind: input, shape index: {}]   ;;  %s2604_s3 = inlined_call_operand.vmem [shape: f32[64,8], index: 3, kind: input, shape index: {}]   ;;  %s2605_s4 = inlined_call_operand.vmem [shape: f32[1,8], index: 4, kind: input, shape index: {}]   ;;  %s2606_s5 = inlined_call_operand.hbm [shape: f32[8,8], index: 5, kind: output, shape index: {}]  }
   0x1   :  { %v2045_v0 = vld [vmem:[%s2602_s1] sm:$0xff]  ;;  %v2050_v1 = vld [vmem:[%s2602_s1 + $0x8] sm:$0xff]  ;;  %v2055_v2 = vld [vmem:[%s2602_s1 + $0x10] sm:$0xff]  ;;  %1767 = vmatprep.subr.bf16.mxu0 %v2008_v3  ;;  %1486 = vmatprep.mubr.msk.f32.mxu0 %vm2009_vm0, %v2608_v10 }
   0x2   :  { %v46_v4 = vand.u32 4294901760, %v2045_v0  ;;  %v49_v5 = vand.u32 4294901760, %v2050_v1  ;;  %v2063_v6 = vld [vmem:[%s2602_s1 + $0x18] sm:$0xff]  ;;  %v52_v7 = vand.u32 4294901760, %v2055_v2  ;;  %v2069_v8 = vld [vmem:[%s2602_s1 + $0x20] sm:$0xff]  ;;  %v2074_v9 = vld [vmem:[%s2602_s1 + $0x28] sm:$0xff]  ;;  %1743 = vmatprep.subr.bf16.mxu1 %v2008_v3  ;;  %1451 = vmatprep.mubr.msk.f32.mxu1 %vm2009_vm0, %v2608_v10 }
   0x3   :  { %v55_v11 = vand.u32 4294901760, %v2063_v6  ;;  %v2619_v12 = vand.u32 4294901760, %v2069_v8  ;;  %v2617_v13 = vand.u32 4294901760, %v2074_v9  ;;  %v2084_v14 = vld [vmem:[%s2602_s1 + $0x30] sm:$0xff]  ;;  %v2089_v15 = vld [vmem:[%s2602_s1 + $0x38] sm:$0xff] }
   0x4   :  { %v2097_v16 = vsub.f32 %v2045_v0, %v46_v4  ;;  %v2102_v17 = vsub.f32 %v2050_v1, %v49_v5  ;;  %v2107_v18 = vsub.f32 %v2055_v2, %v52_v7  ;;  %v2616_v19 = vand.u32 4294901760, %v2084_v14 }
   0x5   :  { %v2113_v20 = vsub.f32 %v2063_v6, %v55_v11  ;;  %v2118_v21 = vsub.f32 %v2069_v8, %v2619_v12  ;;  %v2123_v22 = vsub.f32 %v2074_v9, %v2617_v13  ;;  %v2615_v23 = vand.u32 4294901760, %v2089_v15 }
   0x6   :  { %v139_v24 = vand.u32 4294901760, %v2097_v16  ;;  %v146_v25 = vand.u32 4294901760, %v2102_v17  ;;  %v153_v26 = vand.u32 4294901760, %v2107_v18  ;;  %v2132_v27 = vsub.f32 %v2084_v14, %v2616_v19 }
   0x7   :  { %v2624_v28 = vand.u32 4294901760, %v2113_v20  ;;  %v2623_v29 = vand.u32 4294901760, %v2118_v21  ;;  %v2622_v30 = vand.u32 4294901760, %v2123_v22  ;;  %v2140_v31 = vsub.f32 %v2089_v15, %v2615_v23 }
   0x8   :  { %10 = vsyncpa [#allocation3], 0  ;;  %v140_v32 = vsub.f32 %v2097_v16, %v139_v24  ;;  %v147_v33 = vsub.f32 %v2102_v17, %v146_v25  ;;  %v154_v34 = vsub.f32 %v2107_v18, %v153_v26  ;;  %v2621_v35 = vand.u32 4294901760, %v2132_v27  ;;  %v2165_v40 = vld [vmem:[%s2602_s1 + $0x40] sm:$0xff]  ;;  %v2170_v41 = vld [vmem:[%s2602_s1 + $0x48] sm:$0xff]  ;;  %s2011_s18 = smov [#allocation2]  }
   0x9   :  { %v161_v36 = vsub.f32 %v2113_v20, %v2624_v28  ;;  %v168_v37 = vsub.f32 %v2118_v21, %v2623_v29  ;;  %v175_v38 = vsub.f32 %v2123_v22, %v2622_v30  ;;  %v2620_v39 = vand.u32 4294901760, %v2140_v31  ;;  %v2175_v45 = vld [vmem:[%s2602_s1 + $0x50] sm:$0xff]  ;;  %v2183_v48 = vld [vmem:[%s2602_s1 + $0x58] sm:$0xff]  ;;  %v2188_v49 = vld [vmem:[%s2602_s1 + $0x60] sm:$0xff]  ;;  %s1253_s19 = sshll.u32 %s2011_s18, 4  ;;  %s1254_s19 = int_to_ptr.vmem [resolvable:$true] %s1253_s19 }
   0xa   :  { %v141_v42 = vand.u32 4294901760, %v140_v32  ;;  %v148_v43 = vand.u32 4294901760, %v147_v33  ;;  %v155_v44 = vand.u32 4294901760, %v154_v34  ;;  %v182_v47 = vsub.f32 %v2132_v27, %v2621_v35  ;;  %v2195_v54 = vld [vmem:[%s2602_s1 + $0x68] sm:$0xff]  ;;  %v2200_v55 = vld [vmem:[%s2602_s1 + $0x70] sm:$0xff]  ;;  %v2221_v32 = vld [vmem:[%s2602_s1 + $0x78] sm:$0xff]  ;;  %p1989_p1 = scmp.lt.s32.totalorder %s1254_s19, %s1254_s19 }
   0xb   :  { %v162_v46 = vand.u32 4294901760, %v161_v36  ;;  %v169_v51 = vand.u32 4294901760, %v168_v37  ;;  %v2612_v52 = vand.u32 4294901760, %v2165_v40  ;;  %v2611_v53 = vand.u32 4294901760, %v2170_v41  ;;  %s1984_s20 = scalar_lea.vmem %s1254_s19, 128 }
   0xc   :  { %v1768_v50 = vpack.c.bf16 %v148_v43, %v141_v42  ;;  %v176_v57 = vand.u32 4294901760, %v175_v38  ;;  %v189_v58 = vsub.f32 %v2140_v31, %v2620_v39  ;;  %v2607_v59 = vand.u32 4294901760, %v2175_v45  ;;  %p1985_p0 = scmp.ne.s32.totalorder %s1254_s19, %s1984_s20  ;;  %p1990_p2 = scmp.lt.s32.totalorder %s1984_s20, %s1984_s20 }
   0xd   :  { %v1771_v56 = vpack.c.bf16 %v162_v46, %v155_v44  ;;  %v2209_v60 = vsub.f32 %v2165_v40, %v2612_v52  ;;  %v2214_v61 = vsub.f32 %v2170_v41, %v2611_v53  ;;  %v2610_v62 = vand.u32 4294901760, %v2183_v48 }
   0xe   :  { %1769 = vmatpush3.bf16.msra.mxu0 %v1768_v50  ;;  %v2614_v63 = vand.u32 4294901760, %v2188_v49  ;;  %v183_v33 = vand.u32 4294901760, %v182_v47  ;;  %v2227_v34 = vsub.f32 %v2175_v45, %v2607_v59  ;;  %v2613_v36 = vand.u32 4294901760, %v2195_v54  ;;  %p1991_p3 = por %p1990_p2, %p1989_p1 }
   0xf   :  { %1770 = vmatprep.subr.bf16.mxu0 %v2008_v3  ;;  %v2618_v37 = vand.u32 4294901760, %v2200_v55  ;;  %v195_v38 = vand.u32 4294901760, %v2209_v60  ;;  %v202_v42 = vand.u32 4294901760, %v2214_v61  ;;  %v2236_v43 = vsub.f32 %v2183_v48, %v2610_v62 }
  0x10   :  { %v2241_v44 = vsub.f32 %v2188_v49, %v2614_v63  ;;  %v1774_v46 = vpack.c.bf16 %v176_v57, %v169_v51  ;;  %v209_v47 = vand.u32 4294901760, %v2227_v34  ;;  %v2247_v50 = vsub.f32 %v2195_v54, %v2613_v36  ;;  %p1992_p4 = pnand %p1991_p3, %p1985_p0 }
  0x11   :  { %v91_v59 = vand.u32 4294901760, %v2221_v32  ;;  %v190_v10 = vand.u32 4294901760, %v189_v58  ;;  %v196_v62 = vsub.f32 %v2209_v60, %v195_v38  ;;  %v203_v53 = vsub.f32 %v2214_v61, %v202_v42 }
  0x12   :  { %1772 = vmatpush3.bf16.msra.mxu0 %v1771_v56  ;;  %v216_v52 = vand.u32 4294901760, %v2236_v43  ;;  %v223_v51 = vand.u32 4294901760, %v2241_v44  ;;  %v2258_v57 = vsub.f32 %v2200_v55, %v2618_v37  ;;  %v210_v36 = vsub.f32 %v2227_v34, %v209_v47 }
  0x13   :  { %1773 = vmatprep.subr.bf16.mxu0 %v2008_v3  ;;  %v230_v58 = vand.u32 4294901760, %v2247_v50  ;;  %v2266_v63 = vsub.f32 %v2221_v32, %v91_v59  ;;  %v1777_v23 = vpack.c.bf16 %v190_v10, %v183_v33  ;;  %v197_v19 = vand.u32 4294901760, %v196_v62  ;;  %v691_v32 = vld [vmem:[%s2604_s3 + $0x10] sm:$0xff] }
  0x14   :  { %v217_v56 = vsub.f32 %v2236_v43, %v216_v52  ;;  %v204_v13 = vand.u32 4294901760, %v203_v53  ;;  %v224_v37 = vsub.f32 %v2241_v44, %v223_v51  ;;  %v237_v12 = vand.u32 4294901760, %v2258_v57 }
  0x15   :  { %v211_v39 = vand.u32 4294901760, %v210_v36  ;;  %v231_v30 = vsub.f32 %v2247_v50, %v230_v58  ;;  %v244_v29 = vand.u32 4294901760, %v2266_v63  ;;  %v2277_v10 = vpack.c.bf16 %v49_v5, %v46_v4 }
  0x16   :  { %1775 = vmatpush3.bf16.msra.mxu0 %v1774_v46  ;;  %v218_v35 = vand.u32 4294901760, %v217_v56  ;;  %v1780_v28 = vpack.c.bf16 %v204_v13, %v197_v19  ;;  %v238_v53 = vsub.f32 %v2258_v57, %v237_v12  ;;  %v225_v33 = vand.u32 4294901760, %v224_v37 }
  0x17   :  { %1776 = vmatprep.subr.bf16.mxu0 %v2008_v3  ;;  %v232_v36 = vand.u32 4294901760, %v231_v30  ;;  %v245_v46 = vsub.f32 %v2266_v63, %v244_v29  ;;  %1745 = vmatpush3.bf16.msra.mxu1 %v2277_v10  ;;  %v2287_v0 = vpack.c.bf16 %v55_v11, %v52_v7  ;;  %v2293_v1 = vpack.c.bf16 %v146_v25, %v139_v24 }
  0x18   :  { %v1783_v62 = vpack.c.bf16 %v218_v35, %v211_v39  ;;  %v2625_v4 = vand.u32 4294901760, %v2113_v20  ;;  %v2626_v13 = vand.u32 4294901760, %v2118_v21  ;;  %v2627_v2 = vand.u32 4294901760, %v2123_v22  ;;  %1746 = vmatprep.subr.bf16.mxu1 %v2008_v3 }
  0x19   :  { %v2628_v6 = vand.u32 4294901760, %v2132_v27  ;;  %v2629_v7 = vand.u32 4294901760, %v2140_v31  ;;  %v2316_v24 = vpack.c.bf16 %v216_v52, %v209_v47  ;;  %v2318_v25 = vpack.c.bf16 %v230_v58, %v223_v51 }
  0x1a   :  { %1778 = vmatpush3.bf16.msra.mxu0 %v1777_v23  ;;  %v2299_v5 = vpack.c.bf16 %v2625_v4, %v153_v26  ;;  %v2305_v19 = vpack.c.bf16 %v2627_v2, %v2626_v13  ;;  %v2314_v23 = vpack.c.bf16 %v202_v42, %v195_v38  ;;  %v2321_v26 = vpack.c.bf16 %v244_v29, %v237_v12  ;;  %v21_v29 = vld [vmem:[%s2601_s0] sm:$0xff]  ;;  %v695_v13 = vld [vmem:[%s2604_s3 + $0x30] sm:$0xff]  ;;  %v696_v2 = vld [vmem:[%s2604_s3 + $0x38] sm:$0xff] }
  0x1b   :  { %1779 = vmatprep.subr.bf16.mxu0 %v2008_v3  ;;  %v2312_v11 = vpack.c.bf16 %v2629_v7, %v2628_v6  ;;  %1748 = vmatpush3.bf16.msra.mxu1 %v2287_v0  ;;  %v239_v30 = vand.u32 4294901760, %v238_v53  ;;  %v246_v35 = vand.u32 4294901760, %v245_v46  ;;  %v2630_v39 = vand.u32 4294901760, %v2069_v8 }
  0x1c   :  { %1749 = vmatprep.subr.bf16.mxu1 %v2008_v3  ;;  %v2631_v37 = vand.u32 4294901760, %v2074_v9  ;;  %v2632_v38 = vand.u32 4294901760, %v2084_v14  ;;  %v2633_v8 = vand.u32 4294901760, %v2089_v15  ;;  %v2345_v9 = vand.u32 4294901760, %v21_v29 }
  0x1d   :  { %v1789_v12 = vpack.c.bf16 %v246_v35, %v239_v30  ;;  %v1792_v47 = vpack.c.bf16 %v2102_v17, %v2097_v16  ;;  %v2634_v51 = vand.u32 4294901760, %v2165_v40  ;;  %v2635_v14 = vand.u32 4294901760, %v2170_v41 }
  0x1e   :  { %1781 = vmatpush3.bf16.msra.mxu0 %v1780_v28  ;;  %v1786_v28 = vpack.c.bf16 %v232_v36, %v225_v33  ;;  %v2329_v52 = vpack.c.bf16 %v2631_v37, %v2630_v39  ;;  %v2341_v42 = vpack.c.bf16 %v2633_v8, %v2632_v38  ;;  %v1795_v15 = vpack.c.bf16 %v2113_v20, %v2107_v18 }
  0x1f   :  { %1782 = vmatprep.subr.bf16.mxu0 %v2008_v3  ;;  %v2354_v56 = vpack.c.bf16 %v2635_v14, %v2634_v51  ;;  %v2636_v58 = vmov 0.0   ;;  %v2637_v16 = vand.u32 4294901760, %v2175_v45  ;;  %v2638_v17 = vand.u32 4294901760, %v2183_v48 }
  0x20   :  { %1751 = vmatpush3.bf16.msra.mxu1 %v2329_v52  ;;  %v127_v41 = vsub.f32 %v21_v29, %v2345_v9  ;;  %v1798_v18 = vpack.c.bf16 %v2123_v22, %v2118_v21  ;;  %v2639_v20 = vand.u32 4294901760, %v2188_v49  ;;  %v2640_v45 = vand.u32 4294901760, %v2195_v54 }
  0x21   :  { %1752 = vmatprep.subr.bf16.mxu1 %v2008_v3  ;;  %v2368_v40 = vpack.c.bf16 %v2638_v17, %v2637_v16  ;;  %v1801_v33 = vpack.c.bf16 %v2140_v31, %v2132_v27  ;;  %v2641_v36 = vand.u32 4294901760, %v2200_v55  ;;  %v1804_v49 = vpack.c.bf16 %v2214_v61, %v2209_v60  ;;  %v689_v55 = vld [vmem:[%s2604_s3] sm:$0xff] }
  0x22   :  { %1784 = vmatpush3.bf16.msra.mxu0 %v1783_v62  ;;  %v128_v53 = vand.u32 4294901760, %v127_v41  ;;  %v2380_v48 = vpack.c.bf16 %v2640_v45, %v2639_v20  ;;  %v1807_v27 = vpack.c.bf16 %v2236_v43, %v2227_v34  ;;  %v1810_v31 = vpack.c.bf16 %v2247_v50, %v2241_v44  ;;  %v692_v34 = vld [vmem:[%s2604_s3 + $0x18] sm:$0xff] }
  0x23   :  { %1785 = vmatprep.subr.bf16.mxu0 %v2008_v3  ;;  %v2391_v21 = vpack.c.bf16 %v91_v59, %v2641_v36  ;;  %v1813_v54 = vpack.c.bf16 %v2266_v63, %v2258_v57  ;;  %v690_v59 = vld [vmem:[%s2604_s3 + $0x8] sm:$0xff]  ;;  %v709_v60 = vand.u32 4294901760, %v689_v55  ;;  %v715_v43 = vand.u32 4294901760, %v691_v32  ;;  %v693_v57 = vld [vmem:[%s2604_s3 + $0x20] sm:$0xff] }
  0x24   :  { %1754 = vmatpush3.bf16.msra.mxu1 %v2341_v42  ;;  %v129_v62 = vsub.f32 %v127_v41, %v128_v53  ;;  %v712_v61 = vand.u32 4294901760, %v690_v59  ;;  %v718_v44 = vand.u32 4294901760, %v692_v34  ;;  %v721_v46 = vand.u32 4294901760, %v693_v57 }
  0x25   :  { %1755 = vmatprep.subr.bf16.mxu1 %v2008_v3  ;;  %vm704_vm2 = vcmask 523264   ;;  %vm1245_vm3 = vcmask 64512  }
  0x26   :  { %1787 = vmatpush3.bf16.msra.mxu0 %v1786_v28  ;;  %v130_v22 = vand.u32 4294901760, %v129_v62  ;;  %v2472_v63 = vpack.c.bf16 %v712_v61, %v709_v60  ;;  %v2482_v50 = vpack.c.bf16 %v718_v44, %v715_v43  ;;  %v2494_v4 = vsub.f32 %v690_v59, %v712_v61 }
  0x27   :  { %1788 = vmatprep.subr.bf16.mxu0 %v2008_v3  ;;  %v2506_v6 = vsub.f32 %v692_v34, %v718_v44  ;;  %v2509_v7 = vsub.f32 %v693_v57, %v721_v46 }
  0x28   :  { %1757 = vmatpush3.bf16.msra.mxu1 %v2354_v56 }
  0x29   :  { %1758 = vmatprep.subr.bf16.mxu1 %v2008_v3  ;;  %v815_v38 = vand.u32 4294901760, %v2506_v6 }
  0x2a   :  { %1790 = vmatpush3.bf16.msra.mxu0 %v1789_v12 }
  0x2b   :  { %1791 = vmatprep.subr.bf16.mxu0 %v2008_v3 }
  0x2c   :  { %1760 = vmatpush3.bf16.msra.mxu1 %v2368_v40 }
  0x2d   :  { %1487 = vmatmul.mubr.f32.vlgmr.msra.gmra.mrb[0].mxu0 %v2345_v9  ;;  %1761 = vmatprep.subr.bf16.mxu1 %v2008_v3 }
  0x2e   :  { %1793 = vmatpush3.bf16.msra.mxu0 %v1792_v47  ;;  %1521 = vmatprep.mubr.msk.f32.mxu0 %vm2009_vm0, %v2636_v58  ;;  %v816_v47 = vsub.f32 %v2506_v6, %v815_v38 }
  0x2f   :  { %1794 = vmatprep.subr.bf16.mxu0 %v2008_v3 }
  0x30   :  { %1763 = vmatpush3.bf16.msra.mxu1 %v2380_v48 }
  0x31   :  { %1764 = vmatprep.subr.bf16.mxu1 %v2008_v3 }
  0x32   :  { %1796 = vmatpush3.bf16.msra.mxu0 %v1795_v15  ;;  %v822_v15 = vand.u32 4294901760, %v2509_v7 }
  0x33   :  { %1797 = vmatprep.subr.bf16.mxu0 %v2008_v3 }
  0x34   :  { %1766 = vmatpush3.bf16.msra.mxu1 %v2391_v21 }
  0x35   :  { %1887 = vmatprep.subr.bf16.mxu1 %v2008_v3 }
  0x36   :  { %1799 = vmatpush3.bf16.msra.mxu0 %v1798_v18 }
  0x37   :  { %1800 = vmatprep.subr.bf16.mxu0 %v2008_v3  ;;  %1452 = vmatmul.mubr.f32.vlgmr.msra.gmra.mrb[0].mxu1 %v130_v22 }
  0x38   :  { %1645 = vmatprep.mubr.msk.f32.mxu1 %vm2009_vm0, %v2636_v58  ;;  %1889 = vmatpush3.bf16.msra.mxu1 %v2472_v63 }
  0x39   :  { %1890 = vmatprep.subr.bf16.mxu1 %v2008_v3 }
  0x3a   :  { %1802 = vmatpush3.bf16.msra.mxu0 %v1801_v33 }
  0x3b   :  { %1803 = vmatprep.subr.bf16.mxu0 %v2008_v3 }
  0x3c   :  { %1892 = vmatpush3.bf16.msra.mxu1 %v2482_v50 }
  0x3d   :  { %1893 = vmatprep.subr.bf16.mxu1 %v2008_v3 }
  0x3e   :  { %1805 = vmatpush3.bf16.msra.mxu0 %v1804_v49 }
  0x3f   :  { %1806 = vmatprep.subr.bf16.mxu0 %v2008_v3 }
  0x42   :  { %1808 = vmatpush3.bf16.msra.mxu0 %v1807_v27 }
  0x43   :  { %1809 = vmatprep.subr.bf16.mxu0 %v2008_v3 }
  0x46   :  { %1811 = vmatpush3.bf16.msra.mxu0 %v1810_v31 }
  0x47   :  { %1812 = vmatprep.subr.bf16.mxu0 %v2008_v3 }
  0x4a   :  { %1814 = vmatpush3.bf16.msra.mxu0 %v1813_v54 }
  0x4b   :  { %1815 = vmatprep.subr.bf16.mxu0 %v2008_v3 }
  0x4d   :  { %1522 = vmatmul.mubr.f32.vlgmr.msra.gmra.mrb[0].mxu0 %v127_v41 }
  0x4e   :  { %1817 = vmatpush3.bf16.msra.mxu0 %v2277_v10  ;;  %1556 = vmatprep.mubr.msk.f32.mxu0 %vm2009_vm0, %v2636_v58 }
  0x4f   :  { %1818 = vmatprep.subr.bf16.mxu0 %v2008_v3 }
  0x52   :  { %1820 = vmatpush3.bf16.msra.mxu0 %v2287_v0 }
  0x53   :  { %1821 = vmatprep.subr.bf16.mxu0 %v2008_v3 }
  0x56   :  { %1823 = vmatpush3.bf16.msra.mxu0 %v2329_v52 }
  0x57   :  { %1824 = vmatprep.subr.bf16.mxu0 %v2008_v3 }
  0x5a   :  { %1826 = vmatpush3.bf16.msra.mxu0 %v2341_v42 }
  0x5b   :  { %1827 = vmatprep.subr.bf16.mxu0 %v2008_v3 }
  0x5e   :  { %1829 = vmatpush3.bf16.msra.mxu0 %v2354_v56 }
  0x5f   :  { %1830 = vmatprep.subr.bf16.mxu0 %v2008_v3 }
  0x62   :  { %1832 = vmatpush3.bf16.msra.mxu0 %v2368_v40 }
  0x63   :  { %1833 = vmatprep.subr.bf16.mxu0 %v2008_v3 }
  0x66   :  { %1835 = vmatpush3.bf16.msra.mxu0 %v2380_v48 }
  0x67   :  { %1836 = vmatprep.subr.bf16.mxu0 %v2008_v3 }
  0x6a   :  { %1838 = vmatpush3.bf16.msra.mxu0 %v2391_v21 }
  0x6b   :  { %1839 = vmatprep.subr.bf16.mxu0 %v2008_v3 }
  0x6d   :  { %1557 = vmatmul.mubr.f32.vlgmr.msra.gmra.mrb[0].mxu0 %v128_v53 }
  0x6e   :  { %1841 = vmatpush3.bf16.msra.mxu0 %v2293_v1  ;;  %1591 = vmatprep.mubr.msk.f32.mxu0 %vm2009_vm0, %v2636_v58  ;;  %v2492_v1 = vsub.f32 %v689_v55, %v709_v60 }
  0x6f   :  { %1842 = vmatprep.subr.bf16.mxu0 %v2008_v3 }
  0x70   :  { %v1912_v49 = vpack.c.bf16 %v2494_v4, %v2492_v1 }
  0x72   :  { %1844 = vmatpush3.bf16.msra.mxu0 %v2299_v5 }
  0x73   :  { %1845 = vmatprep.subr.bf16.mxu0 %v2008_v3 }
  0x76   :  { %1847 = vmatpush3.bf16.msra.mxu0 %v2305_v19  ;;  %v2504_v19 = vsub.f32 %v691_v32, %v715_v43  ;;  %v1261_v32 = vld [vmem:[%s2603_s2] ss:$0 sm:$0xff] }
  0x77   :  { %1848 = vmatprep.subr.bf16.mxu0 %v2008_v3 }
  0x78   :  { %v808_v29 = vand.u32 4294901760, %v2504_v19  ;;  %v1915_v27 = vpack.c.bf16 %v2506_v6, %v2504_v19 }
  0x7a   :  { %1850 = vmatpush3.bf16.msra.mxu0 %v2312_v11  ;;  %v1939_v59 = vpack.c.bf16 %v815_v38, %v808_v29 }
  0x7b   :  { %1851 = vmatprep.subr.bf16.mxu0 %v2008_v3 }
  0x7e   :  { %1853 = vmatpush3.bf16.msra.mxu0 %v2314_v23  ;;  %v727_v23 = vand.u32 4294901760, %v695_v13 }
  0x7f   :  { %1854 = vmatprep.subr.bf16.mxu0 %v2008_v3 }
  0x80   :  { %v2518_v30 = vsub.f32 %v695_v13, %v727_v23 }
  0x82   :  { %1856 = vmatpush3.bf16.msra.mxu0 %v2316_v24  ;;  %v730_v24 = vand.u32 4294901760, %v696_v2  ;;  %v836_v20 = vand.u32 4294901760, %v2518_v30 }
  0x83   :  { %1857 = vmatprep.subr.bf16.mxu0 %v2008_v3 }
  0x84   :  { %v2516_v28 = vpack.c.bf16 %v730_v24, %v727_v23  ;;  %v2520_v35 = vsub.f32 %v696_v2, %v730_v24  ;;  %v837_v62 = vsub.f32 %v2518_v30, %v836_v20 }
  0x86   :  { %1859 = vmatpush3.bf16.msra.mxu0 %v2318_v25  ;;  %v794_v25 = vand.u32 4294901760, %v2492_v1  ;;  %v843_v45 = vand.u32 4294901760, %v2520_v35  ;;  %v838_v36 = vand.u32 4294901760, %v837_v62  ;;  %v1921_v54 = vpack.c.bf16 %v2520_v35, %v2518_v30 }
  0x87   :  { %1860 = vmatprep.subr.bf16.mxu0 %v2008_v3 }
  0x88   :  { %v795_v39 = vsub.f32 %v2492_v1, %v794_v25  ;;  %v844_v33 = vsub.f32 %v2520_v35, %v843_v45  ;;  %v1945_v61 = vpack.c.bf16 %v843_v45, %v836_v20 }
  0x8a   :  { %1862 = vmatpush3.bf16.msra.mxu0 %v2321_v26  ;;  %v801_v26 = vand.u32 4294901760, %v2494_v4  ;;  %v796_v12 = vand.u32 4294901760, %v795_v39 }
  0x8b   :  { %1863 = vmatprep.subr.bf16.mxu0 %v2008_v3 }
  0x8c   :  { %v802_v37 = vsub.f32 %v2494_v4, %v801_v26  ;;  %v1936_v55 = vpack.c.bf16 %v801_v26, %v794_v25 }
  0x8d   :  { %1592 = vmatmul.mubr.f32.vlgmr.msra.gmra.mrb[0].mxu0 %v2345_v9 }
  0x8e   :  { %1865 = vmatpush3.bf16.msra.mxu0 %v2277_v10  ;;  %1626 = vmatprep.mubr.msk.f32.mxu0 %vm2009_vm0, %v2636_v58  ;;  %v694_v10 = vld [vmem:[%s2604_s3 + $0x28] sm:$0xff] }
  0x8f   :  { %1866 = vmatprep.subr.bf16.mxu0 %v2008_v3 }
  0x92   :  { %1868 = vmatpush3.bf16.msra.mxu0 %v2287_v0  ;;  %v724_v0 = vand.u32 4294901760, %v694_v10 }
  0x93   :  { %1869 = vmatprep.subr.bf16.mxu0 %v2008_v3 }
  0x94   :  { %v2496_v5 = vpack.c.bf16 %v724_v0, %v721_v46  ;;  %v2511_v11 = vsub.f32 %v694_v10, %v724_v0 }
  0x96   :  { %1871 = vmatpush3.bf16.msra.mxu0 %v2329_v52  ;;  %1895 = vmatpush3.bf16.msra.mxu1 %v2496_v5  ;;  %v829_v16 = vand.u32 4294901760, %v2511_v11  ;;  %v1918_v31 = vpack.c.bf16 %v2511_v11, %v2509_v7 }
  0x97   :  { %1872 = vmatprep.subr.bf16.mxu0 %v2008_v3  ;;  %1896 = vmatprep.subr.bf16.mxu1 %v2008_v3 }
  0x98   :  { %v830_v41 = vsub.f32 %v2511_v11, %v829_v16  ;;  %v1942_v60 = vpack.c.bf16 %v829_v16, %v822_v15 }
  0x9a   :  { %1874 = vmatpush3.bf16.msra.mxu0 %v2341_v42  ;;  %1898 = vmatpush3.bf16.msra.mxu1 %v2516_v28  ;;  %v803_v42 = vand.u32 4294901760, %v802_v37  ;;  %v831_v18 = vand.u32 4294901760, %v830_v41 }
  0x9b   :  { %1875 = vmatprep.subr.bf16.mxu0 %v2008_v3  ;;  %1899 = vmatprep.subr.bf16.mxu1 %v2008_v3 }
  0x9c   :  { %v1900_v51 = vpack.c.bf16 %v803_v42, %v796_v12 }
  0x9e   :  { %1877 = vmatpush3.bf16.msra.mxu0 %v2354_v56  ;;  %v817_v56 = vand.u32 4294901760, %v816_v47 }
  0x9f   :  { %1878 = vmatprep.subr.bf16.mxu0 %v2008_v3 }
  0xa2   :  { %1880 = vmatpush3.bf16.msra.mxu0 %v2368_v40  ;;  %v823_v40 = vsub.f32 %v2509_v7, %v822_v15 }
  0xa3   :  { %1881 = vmatprep.subr.bf16.mxu0 %v2008_v3 }
  0xa4   :  { %v824_v53 = vand.u32 4294901760, %v823_v40 }
  0xa6   :  { %1883 = vmatpush3.bf16.msra.mxu0 %v2380_v48  ;;  %v1906_v48 = vpack.c.bf16 %v831_v18, %v824_v53 }
  0xa7   :  { %1884 = vmatprep.subr.bf16.mxu0 %v2008_v3 }
  0xaa   :  { %1886 = vmatpush3.bf16.msra.mxu0 %v2391_v21  ;;  %v845_v21 = vand.u32 4294901760, %v844_v33 }
  0xac   :  { %v1909_v22 = vpack.c.bf16 %v845_v21, %v838_v36 }
  0xad   :  { %1627 = vmatmul.mubr.f32.vlgmr.msra.gmra.mrb[0].mxu0 %v2345_v9  ;;  %v809_v9 = vsub.f32 %v2504_v19, %v808_v29 }
  0xaf   :  { %v810_v14 = vand.u32 4294901760, %v809_v9 }
  0xb1   :  { %v1903_v17 = vpack.c.bf16 %v817_v56, %v810_v14 }
 0x10a   :  { %v132_v52 = vpop.f32.mrb[0].mxu1 }
 0x10b   :  { %v1453_v8 = vpop.f32.mrb[1].mxu1  ;;  %v133_v34 = vadd.f32 %v1261_v32, %v132_v52 }
 0x180   :  { %v682_v43 = vpop.f32.mrb[0].mxu0 }
 0x181   :  { %v1960_v44 = vadd.f32 %v682_v43, %v133_v34  ;;  %v1628_v57 = vpop.f32.mrb[1].mxu0 }
 0x183   :  { %vm686_vm1 = vcmp.gt.f32.partialorder %v1960_v44, 0.0  ;;  %v687_v10 = vmul.f32 0.01, %v1960_v44 }
 0x185   :  { %v688_v46 = vsel %vm686_vm1, %v1960_v44, %v687_v10 }
 0x186   :  { %v706_v0 = vsel %vm704_vm2, %v688_v46, 0 }
 0x187   :  { %v781_v1 = vand.u32 4294901760, %v706_v0 }
 0x189   :  { %v782_v4 = vsub.f32 %v706_v0, %v781_v1 }
 0x18b   :  { %v783_v13 = vand.u32 4294901760, %v782_v4 }
 0x18d   :  { %v784_v2 = vsub.f32 %v782_v4, %v783_v13 }
 0x18f   :  { %v785_v19 = vand.u32 4294901760, %v784_v2 }
 0x191   :  { %1646 = vmatmul.mubr.f32.vlgmr.msra.gmra.mrb[2].mxu1 %v785_v19 }
 0x192   :  { %1901 = vmatpush3.bf16.msra.mxu1 %v1900_v51  ;;  %1664 = vmatprep.mubr.msk.f32.mxu1 %vm2009_vm0, %v2636_v58 }
 0x193   :  { %1902 = vmatprep.subr.bf16.mxu1 %v2008_v3 }
 0x196   :  { %1904 = vmatpush3.bf16.msra.mxu1 %v1903_v17 }
 0x197   :  { %1905 = vmatprep.subr.bf16.mxu1 %v2008_v3 }
 0x19a   :  { %1907 = vmatpush3.bf16.msra.mxu1 %v1906_v48 }
 0x19b   :  { %1908 = vmatprep.subr.bf16.mxu1 %v2008_v3 }
 0x19e   :  { %1910 = vmatpush3.bf16.msra.mxu1 %v1909_v22 }
 0x19f   :  { %1911 = vmatprep.subr.bf16.mxu1 %v2008_v3 }
 0x1a1   :  { %1665 = vmatmul.mubr.f32.vlgmr.msra.gmra.mrb[2].mxu1 %v781_v1 }
 0x1a2   :  { %1913 = vmatpush3.bf16.msra.mxu1 %v1912_v49  ;;  %1683 = vmatprep.mubr.msk.f32.mxu1 %vm2009_vm0, %v2636_v58 }
 0x1a3   :  { %1914 = vmatprep.subr.bf16.mxu1 %v2008_v3 }
 0x1a6   :  { %1916 = vmatpush3.bf16.msra.mxu1 %v1915_v27 }
 0x1a7   :  { %1917 = vmatprep.subr.bf16.mxu1 %v2008_v3 }
 0x1aa   :  { %1919 = vmatpush3.bf16.msra.mxu1 %v1918_v31 }
 0x1ab   :  { %1920 = vmatprep.subr.bf16.mxu1 %v2008_v3 }
 0x1ae   :  { %1922 = vmatpush3.bf16.msra.mxu1 %v1921_v54 }
 0x1af   :  { %1923 = vmatprep.subr.bf16.mxu1 %v2008_v3 }
 0x1b1   :  { %1684 = vmatmul.mubr.f32.vlgmr.msra.gmra.mrb[2].mxu1 %v782_v4 }
 0x1b2   :  { %1925 = vmatpush3.bf16.msra.mxu1 %v2472_v63  ;;  %1702 = vmatprep.mubr.msk.f32.mxu1 %vm2009_vm0, %v2636_v58 }
 0x1b3   :  { %1926 = vmatprep.subr.bf16.mxu1 %v2008_v3 }
 0x1b6   :  { %1928 = vmatpush3.bf16.msra.mxu1 %v2482_v50 }
 0x1b7   :  { %1929 = vmatprep.subr.bf16.mxu1 %v2008_v3 }
 0x1ba   :  { %1931 = vmatpush3.bf16.msra.mxu1 %v2496_v5 }
 0x1bb   :  { %1932 = vmatprep.subr.bf16.mxu1 %v2008_v3 }
 0x1be   :  { %1934 = vmatpush3.bf16.msra.mxu1 %v2516_v28 }
 0x1bf   :  { %1935 = vmatprep.subr.bf16.mxu1 %v2008_v3 }
 0x1c1   :  { %1703 = vmatmul.mubr.f32.vlgmr.msra.gmra.mrb[2].mxu1 %v783_v13 }
 0x1c2   :  { %1937 = vmatpush3.bf16.msra.mxu1 %v1936_v55  ;;  %1721 = vmatprep.mubr.msk.f32.mxu1 %vm2009_vm0, %v2636_v58 }
 0x1c3   :  { %1938 = vmatprep.subr.bf16.mxu1 %v2008_v3 }
 0x1c6   :  { %1940 = vmatpush3.bf16.msra.mxu1 %v1939_v59 }
 0x1c7   :  { %1941 = vmatprep.subr.bf16.mxu1 %v2008_v3 }
 0x1ca   :  { %1943 = vmatpush3.bf16.msra.mxu1 %v1942_v60 }
 0x1cb   :  { %1944 = vmatprep.subr.bf16.mxu1 %v2008_v3 }
 0x1ce   :  { %1946 = vmatpush3.bf16.msra.mxu1 %v1945_v61 }
 0x1cf   :  { %1947 = vmatprep.subr.bf16.mxu1 %v2008_v3 }
 0x1d1   :  { %1722 = vmatmul.mubr.f32.vlgmr.msra.gmra.mrb[2].mxu1 %v781_v1 }
 0x1d2   :  { %1949 = vmatpush3.bf16.msra.mxu1 %v2472_v63  ;;  %1740 = vmatprep.mubr.msk.f32.mxu1 %vm2009_vm0, %v2636_v58  ;;  %v1262_v63 = vld [vmem:[%s2605_s4] ss:$0 sm:$0xff] }
 0x1d3   :  { %1950 = vmatprep.subr.bf16.mxu1 %v2008_v3 }
 0x1d6   :  { %1952 = vmatpush3.bf16.msra.mxu1 %v2482_v50 }
 0x1d7   :  { %1953 = vmatprep.subr.bf16.mxu1 %v2008_v3 }
 0x1da   :  { %1955 = vmatpush3.bf16.msra.mxu1 %v2496_v5 }
 0x1db   :  { %1956 = vmatprep.subr.bf16.mxu1 %v2008_v3 }
 0x1de   :  { %1958 = vmatpush3.bf16.msra.mxu1 %v2516_v28 }
 0x1e1   :  { %1741 = vmatmul.mubr.f32.vlgmr.msra.gmra.mrb[2].mxu1 %v781_v1 }
 0x2b4   :  { %v1241_v58 = vpop.f32.mrb[2].mxu1 }
 0x2b5   :  { %v1961_v6 = vadd.f32 %v1262_v63, %v1241_v58  ;;  %v1742_v7 = vpop.f32.mrb[3].mxu1 }
 0x2b7   :  { %1246 = vst.msk [vmem:[#allocation2] sm:$0xff] %vm1245_vm3, %v1961_v6 }
 0x2b8   :  { %1995 = shalt.err (!%p1992_p4)
}
 0x2b9   :  { %s1996_s23 = scalar_lea.hbm %s2606_s5, 128 }
 0x2ba   :  { %p1997_p5 = scmp.ne.s32.totalorder %s2606_s5, %s1996_s23  ;;  %p2000_p6 = scmp.lt.u32.totalorder %s1996_s23, %s2606_s5 }
 0x2bc   :  { %p2002_p7 = pnand %p2000_p6, %p1997_p5 }
 0x2be   :  { %2005 = shalt.err (!%p2002_p7)
}
 0x2bf   :  { %1256 = dma.vmem_to_hbm [thread:$0]  %s1254_s19, 128, %s2606_s5, [#allocation3]  }
 0x2c0   :  { %2006 = dma.done.wait [#allocation3], 128  }
 0x2c1   :  { %2007 = vsyncadd [#allocation3], 4294967168 }
 0x2c2   :  { %1260 = vsyncpa [#allocation3], 1 }

</bundles_post_ra>
